<compile_context>
chip_gen: v6e
topology: v6e:2x2x1
jax: 0.10.0
libtpu: 0.0.40
codegen_flags: <defaults>
</compile_context>

<pallas_src>
import math
import functools

import jax
import jax.numpy as jnp
from jax.experimental import pallas as pl
from jax.experimental.pallas import tpu as pltpu


# ----------------------------------------------------------------------------
# Pallas kernels
# ----------------------------------------------------------------------------
def _layer_norm(v, g, b, eps=1e-5):
    mu = jnp.mean(v, axis=-1, keepdims=True)
    var = jnp.mean(jnp.square(v - mu), axis=-1, keepdims=True)
    return (v - mu) * jax.lax.rsqrt(var + eps) * g + b


def stacked_block_kernel(
    x_ref, pos_ref, mask_ref,
    wqkv_ref, bqkv_ref, wo_ref, bo_ref,
    g1_ref, be1_ref, g2_ref, be2_ref,
    w1_ref, b1_ref, w2_ref, b2_ref,
    o_ref,
    *, nhead,
):
    """Pre-LN residual attention block.

    Grid = (batch, layer).  The residual stream lives in o_ref (VMEM-resident
    across the layer axis since its block index only depends on the batch axis).
    """
    l = pl.program_id(1)

    # layer 0: initialize residual stream = token embeddings + positional encoding
    @pl.when(l == 0)
    def _init():
        o_ref[0] = x_ref[0] + pos_ref[0]

    x = o_ref[0]                       # (S, D) float32 residual stream
    S, D = x.shape
    H = nhead
    dh = D // H
    scale = 1.0 / math.sqrt(dh)
    bf16 = jnp.bfloat16

    # ---- attention branch (pre-LN) -----------------------------------------
    xn = _layer_norm(x, g1_ref[0], be1_ref[0])                     # f32 (S, D)
    xnb = jnp.broadcast_to(xn.astype(bf16)[None], (H, S, D))       # (H, S, D) bf16

    # fused per-head QKV projection: (H, S, D) @ (H, D, 3*dh) -> (H, S, 3*dh)
    qkv = jnp.einsum('hsd,hdf->hsf', xnb, wqkv_ref[0],
                     preferred_element_type=jnp.float32) + bqkv_ref[0]
    q = qkv[:, :, 0 * dh:1 * dh]
    k = qkv[:, :, 1 * dh:2 * dh]
    v = qkv[:, :, 2 * dh:3 * dh]

    # head-batched scores / softmax (f32 math, bf16 MXU inputs)
    s = jnp.einsum('hqd,hkd->hqk', q.astype(bf16), k.astype(bf16),
                   preferred_element_type=jnp.float32) * scale
    s = s + mask_ref[...][None]                                    # (H, S, S)
    s = s - jnp.max(s, axis=-1, keepdims=True)
    p = jnp.exp(s)
    p = p * pl.reciprocal(jnp.sum(p, axis=-1, keepdims=True), approx=True)

    pv = jnp.einsum('hqk,hkd->hqd', p.astype(bf16), v.astype(bf16),
                    preferred_element_type=jnp.float32)            # (H, S, dh)

    # output projection: accumulate per-head (avoids concatenate / relayout)
    wo = wo_ref[0]                                                 # (H, dh, D) bf16
    attn = bo_ref[0]                                               # (1, D) f32
    for h in range(H):                                             # static unroll, H small
        attn = attn + jnp.dot(pv[h].astype(bf16), wo[h],
                              preferred_element_type=jnp.float32)
    x = x + attn

    # ---- MLP branch (pre-LN, QuickGELU) ------------------------------------
    xn2 = _layer_norm(x, g2_ref[0], be2_ref[0])
    h1 = jnp.dot(xn2.astype(bf16), w1_ref[0],
                 preferred_element_type=jnp.float32) + b1_ref[0]
    h1 = h1 * jax.nn.sigmoid(1.702 * h1)                           # QuickGELU (f32)
    out = jnp.dot(h1.astype(bf16), w2_ref[0],
                  preferred_element_type=jnp.float32) + b2_ref[0]

    o_ref[0] = x + out


def final_layernorm_kernel(x_ref, g_ref, b_ref, o_ref):
    o_ref[...] = _layer_norm(x_ref[...], g_ref[...], b_ref[...])


# ----------------------------------------------------------------------------
# Wrappers
# ----------------------------------------------------------------------------
def text_transformer_forward(x, mask, eos_mask, params):
    B, S, D = x.shape
    H = params["nhead"]
    dh = D // H
    L = params["wqkv"].shape[0]
    F = params["w1"].shape[-1]

    def per_layer(shape):
        n = len(shape)
        return pl.BlockSpec((1,) + shape, lambda b, l, _n=n: (l,) + (0,) * _n)

    def invariant(shape):
        n = len(shape)
        return pl.BlockSpec(shape, lambda b, l, _n=n: (0,) * _n)

    in_specs = [
        pl.BlockSpec((1, S, D), lambda b, l: (b, 0, 0)),   # x (one batch elem / block)
        invariant((1, S, D)),                              # positional encoding
        invariant((S, S)),                                 # additive attention mask
        per_layer((H, D, 3 * dh)),                         # fused per-head QKV weight (bf16)
        per_layer((H, 1, 3 * dh)),                         # fused per-head QKV bias
        per_layer((H, dh, D)),                             # head-split output projection (bf16)
        per_layer((1, D)),                                 # output projection bias
        per_layer((1, D)), per_layer((1, D)),              # ln1 gamma / beta
        per_layer((1, D)), per_layer((1, D)),              # ln2 gamma / beta
        per_layer((D, F)), per_layer((1, F)),              # mlp w1 (bf16) / b1
        per_layer((F, D)), per_layer((1, D)),              # mlp w2 (bf16) / b2
    ]

    out = pl.pallas_call(
        functools.partial(stacked_block_kernel, nhead=H),
        out_shape=jax.ShapeDtypeStruct((B, S, D), x.dtype),
        grid=(B, L),
        in_specs=in_specs,
        out_specs=pl.BlockSpec((1, S, D), lambda b, l: (b, 0, 0)),
        compiler_params=pltpu.CompilerParams(
            dimension_semantics=("parallel", "arbitrary")),
    )(
        x, params["pos_encoder"], mask,
        params["wqkv"], params["bqkv"], params["wo"], params["bo"],
        params["ln1_g"], params["ln1_b"], params["ln2_g"], params["ln2_b"],
        params["w1"], params["b1"], params["w2"], params["b2"],
    )

    # x = x[eos_mask]: boolean gather, one token per sequence (glue, outside Pallas)
    sel = out[eos_mask]                                    # (B, D)

    # final LayerNorm in a small Pallas kernel
    return pl.pallas_call(
        final_layernorm_kernel,
        out_shape=jax.ShapeDtypeStruct(sel.shape, sel.dtype),
    )(sel, params["ln_g"], params["ln_b"])


# ----------------------------------------------------------------------------
# Deterministic parameter construction
# ----------------------------------------------------------------------------
def sinusoidal_pos_encoding(max_length, dim_model):
    pos = jnp.arange(max_length, dtype=jnp.float32)[:, None]
    div_term = jnp.exp(
        jnp.arange(0, dim_model, 2, dtype=jnp.float32) * -(math.log(10000.0) / dim_model)
    )
    pe = jnp.zeros((1, max_length, dim_model), jnp.float32)
    pe = pe.at[0, :, 0::2].set(jnp.sin(pos * div_term))
    pe = pe.at[0, :, 1::2].set(jnp.cos(pos * div_term))
    return pe


def xavier_uniform(key, shape):
    fan_in, fan_out = shape[0], shape[1]
    a = math.sqrt(6.0 / (fan_in + fan_out))
    return jax.random.uniform(key, shape, jnp.float32, -a, a)


def make_params(key, n_layers, dim_model, max_length, dim_ff, nhead):
    D, F, H = dim_model, dim_ff, nhead
    dh = D // H

    wqkv_l, bqkv_l, wo_l, bo_l = [], [], [], []
    g1_l, be1_l, g2_l, be2_l = [], [], [], []
    w1_l, b1_l, w2_l, b2_l = [], [], [], []

    def split_heads(w):                       # (D, D) -> (H, D, dh)
        return jnp.transpose(w.reshape(D, H, dh), (1, 0, 2))

    for _ in range(n_layers):
        key, *ks = jax.random.split(key, 7)
        wq = xavier_uniform(ks[0], (D, D))
        wk = xavier_uniform(ks[1], (D, D))
        wv = xavier_uniform(ks[2], (D, D))
        wo = xavier_uniform(ks[3], (D, D))
        w1 = xavier_uniform(ks[4], (D, F))
        w2 = xavier_uniform(ks[5], (F, D))

        wqkv_l.append(jnp.concatenate(
            [split_heads(wq), split_heads(wk), split_heads(wv)], axis=-1))   # (H, D, 3dh)
        bqkv_l.append(jnp.zeros((H, 1, 3 * dh), jnp.float32))
        wo_l.append(wo.reshape(H, dh, D))                                    # (H, dh, D)
        bo_l.append(jnp.zeros((1, D), jnp.float32))
        g1_l.append(jnp.ones((1, D), jnp.float32)); be1_l.append(jnp.zeros((1, D), jnp.float32))
        g2_l.append(jnp.ones((1, D), jnp.float32)); be2_l.append(jnp.zeros((1, D), jnp.float32))
        w1_l.append(w1); b1_l.append(jnp.zeros((1, F), jnp.float32))
        w2_l.append(w2); b2_l.append(jnp.zeros((1, D), jnp.float32))

    stack = lambda xs: jnp.stack(xs, axis=0)
    return dict(
        pos_encoder=sinusoidal_pos_encoding(max_length, D),
        wqkv=stack(wqkv_l).astype(jnp.bfloat16),
        bqkv=stack(bqkv_l),
        wo=stack(wo_l).astype(jnp.bfloat16),
        bo=stack(bo_l),
        ln1_g=stack(g1_l), ln1_b=stack(be1_l),
        ln2_g=stack(g2_l), ln2_b=stack(be2_l),
        w1=stack(w1_l).astype(jnp.bfloat16), b1=stack(b1_l),
        w2=stack(w2_l).astype(jnp.bfloat16), b2=stack(b2_l),
        ln_g=jnp.ones((1, D), jnp.float32),
        ln_b=jnp.zeros((1, D), jnp.float32),
        nhead=H,
    )


# ----------------------------------------------------------------------------
if __name__ == "__main__":
    # Small shapes consistent with the module
    B, S, D, F, H, L = 2, 8, 32, 64, 4, 2   # batch, max_length, dim_model, dim_ff, nhead, n_layers

    key = jax.random.PRNGKey(0)
    kx, kp = jax.random.split(key)

    params = make_params(kp, n_layers=L, dim_model=D, max_length=S, dim_ff=F, nhead=H)

    # token embeddings
    x = jax.random.normal(kx, (B, S, D), jnp.float32)

    # causal additive attention mask (S, S): 0 = attend, -1e9 = masked future position
    mask = jnp.where(
        jnp.arange(S)[None, :] <= jnp.arange(S)[:, None], 0.0, -1e9
    ).astype(jnp.float32)

    # eos_mask: boolean (B, S) with exactly one True per sequence
    eos_positions = jnp.array([5, 7])
    eos_mask = jax.nn.one_hot(eos_positions, S, dtype=jnp.float32).astype(bool)

    out = text_transformer_forward(x, mask, eos_mask, params)
    out = jax.block_until_ready(out)
    assert out.shape == (B, D) and out.dtype == jnp.float32
    print("KERNEL_OK")
</pallas_src>

<mosaic_0001>
module attributes {stable_mosaic.version = 11 : i64} {
  func.func @stacked_block_kernel(%arg0: i32, %arg1: i32, %arg2: memref<1x8x32xf32, #tpu.memory_space<vmem>>, %arg3: memref<1x8x32xf32, #tpu.memory_space<vmem>>, %arg4: memref<8x8xf32, #tpu.memory_space<vmem>>, %arg5: memref<1x4x32x24xbf16, #tpu.memory_space<vmem>>, %arg6: memref<1x4x1x24xf32, #tpu.memory_space<vmem>>, %arg7: memref<1x4x8x32xbf16, #tpu.memory_space<vmem>>, %arg8: memref<1x1x32xf32, #tpu.memory_space<vmem>>, %arg9: memref<1x1x32xf32, #tpu.memory_space<vmem>>, %arg10: memref<1x1x32xf32, #tpu.memory_space<vmem>>, %arg11: memref<1x1x32xf32, #tpu.memory_space<vmem>>, %arg12: memref<1x1x32xf32, #tpu.memory_space<vmem>>, %arg13: memref<1x32x64xbf16, #tpu.memory_space<vmem>>, %arg14: memref<1x1x64xf32, #tpu.memory_space<vmem>>, %arg15: memref<1x64x32xbf16, #tpu.memory_space<vmem>>, %arg16: memref<1x1x32xf32, #tpu.memory_space<vmem>>, %arg17: memref<1x8x32xf32, #tpu.memory_space<vmem>>) attributes {dimension_semantics = [#tpu.dimension_semantics<parallel>, #tpu.dimension_semantics<arbitrary>], iteration_bounds = array<i64: 2, 2>, scalar_prefetch = 0 : i64, scratch_operands = 0 : i64, tpu.core_type = #tpu.core_type<tc>, window_params = [{transform_indices = @transform_0, window_bounds = array<i64: 1, 8, 32>}, {pipeline_mode = #tpu.pipeline_mode<synchronous>, transform_indices = @transform_1, window_bounds = array<i64: 1, 8, 32>}, {pipeline_mode = #tpu.pipeline_mode<synchronous>, transform_indices = @transform_2, window_bounds = array<i64: 8, 8>}, {transform_indices = @transform_3, window_bounds = array<i64: 1, 4, 32, 24>}, {transform_indices = @transform_4, window_bounds = array<i64: 1, 4, 1, 24>}, {transform_indices = @transform_5, window_bounds = array<i64: 1, 4, 8, 32>}, {transform_indices = @transform_6, window_bounds = array<i64: 1, 1, 32>}, {transform_indices = @transform_7, window_bounds = array<i64: 1, 1, 32>}, {transform_indices = @transform_8, window_bounds = array<i64: 1, 1, 32>}, {transform_indices = @transform_9, window_bounds = array<i64: 1, 1, 32>}, {transform_indices = @transform_10, window_bounds = array<i64: 1, 1, 32>}, {transform_indices = @transform_11, window_bounds = array<i64: 1, 32, 64>}, {transform_indices = @transform_12, window_bounds = array<i64: 1, 1, 64>}, {transform_indices = @transform_13, window_bounds = array<i64: 1, 64, 32>}, {transform_indices = @transform_14, window_bounds = array<i64: 1, 1, 32>}, {transform_indices = @transform_15, window_bounds = array<i64: 1, 8, 32>}]} {
    %c0_i32 = arith.constant 0 : i32
    %0 = arith.cmpi eq, %arg1, %c0_i32 : i32
    %1 = arith.extui %0 : i1 to i32
    %c0_i32_0 = arith.constant 0 : i32
    %2 = arith.cmpi ne, %1, %c0_i32_0 : i32
    scf.if %2 {
      %c0_70 = arith.constant 0 : index
      %c0_71 = arith.constant 0 : index
      %c0_72 = arith.constant 0 : index
      %155 = vector.load %arg2[%c0_70, %c0_71, %c0_72] : memref<1x8x32xf32, #tpu.memory_space<vmem>>, vector<1x8x32xf32>
      %156 = vector.shape_cast %155 : vector<1x8x32xf32> to vector<8x32xf32>
      %c0_73 = arith.constant 0 : index
      %c0_74 = arith.constant 0 : index
      %c0_75 = arith.constant 0 : index
      %157 = vector.load %arg3[%c0_73, %c0_74, %c0_75] : memref<1x8x32xf32, #tpu.memory_space<vmem>>, vector<1x8x32xf32>
      %158 = vector.shape_cast %157 : vector<1x8x32xf32> to vector<8x32xf32>
      %159 = arith.addf %156, %158 : vector<8x32xf32>
      %c0_76 = arith.constant 0 : index
      %c0_77 = arith.constant 0 : index
      %c0_78 = arith.constant 0 : index
      %160 = vector.load %arg17[%c0_76, %c0_77, %c0_78] : memref<1x8x32xf32, #tpu.memory_space<vmem>>, vector<1x8x32xf32>
      %161 = vector.shape_cast %160 : vector<1x8x32xf32> to vector<8x32xf32>
      %162 = vector.shape_cast %159 : vector<8x32xf32> to vector<1x8x32xf32>
      tpu.vector_store %arg17[%c0_76, %c0_77, %c0_78], %162 {strides = array<i32>} : memref<1x8x32xf32, #tpu.memory_space<vmem>>, vector<1x8x32xf32>,
    } else {
    }
    %c0 = arith.constant 0 : index
    %c0_1 = arith.constant 0 : index
    %c0_2 = arith.constant 0 : index
    %3 = vector.load %arg17[%c0, %c0_1, %c0_2] : memref<1x8x32xf32, #tpu.memory_space<vmem>>, vector<1x8x32xf32>
    %4 = vector.shape_cast %3 : vector<1x8x32xf32> to vector<8x32xf32>
    %c0_3 = arith.constant 0 : index
    %c0_4 = arith.constant 0 : index
    %c0_5 = arith.constant 0 : index
    %5 = vector.load %arg9[%c0_3, %c0_4, %c0_5] : memref<1x1x32xf32, #tpu.memory_space<vmem>>, vector<1x1x32xf32>
    %6 = vector.shape_cast %5 : vector<1x1x32xf32> to vector<1x32xf32>
    %c0_6 = arith.constant 0 : index
    %c0_7 = arith.constant 0 : index
    %c0_8 = arith.constant 0 : index
    %7 = vector.load %arg10[%c0_6, %c0_7, %c0_8] : memref<1x1x32xf32, #tpu.memory_space<vmem>>, vector<1x1x32xf32>
    %8 = vector.shape_cast %7 : vector<1x1x32xf32> to vector<1x32xf32>
    %cst = arith.constant dense<0.000000e+00> : vector<8xf32>
    %9 = vector.multi_reduction <add>, %4, %cst [1] : vector<8x32xf32> to vector<8xf32>
    %10 = vector.shape_cast %9 : vector<8xf32> to vector<8x1xf32>
    %cst_9 = arith.constant 3.200000e+01 : f32
    %11 = vector.broadcast %cst_9 : f32 to vector<8x1xf32>
    %12 = arith.divf %10, %11 : vector<8x1xf32>
    %13 = vector.broadcast %12 : vector<8x1xf32> to vector<8x32xf32>
    %14 = arith.subf %4, %13 : vector<8x32xf32>
    %15 = arith.mulf %14, %14 : vector<8x32xf32>
    %cst_10 = arith.constant dense<0.000000e+00> : vector<8xf32>
    %16 = vector.multi_reduction <add>, %15, %cst_10 [1] : vector<8x32xf32> to vector<8xf32>
    %17 = vector.shape_cast %16 : vector<8xf32> to vector<8x1xf32>
    %cst_11 = arith.constant 3.200000e+01 : f32
    %18 = vector.broadcast %cst_11 : f32 to vector<8x1xf32>
    %19 = arith.divf %17, %18 : vector<8x1xf32>
    %20 = vector.broadcast %12 : vector<8x1xf32> to vector<8x32xf32>
    %21 = arith.subf %4, %20 : vector<8x32xf32>
    %cst_12 = arith.constant 9.99999974E-6 : f32
    %22 = vector.broadcast %cst_12 : f32 to vector<8x1xf32>
    %23 = arith.addf %19, %22 : vector<8x1xf32>
    %24 = math.rsqrt %23 : vector<8x1xf32>
    %25 = vector.broadcast %24 : vector<8x1xf32> to vector<8x32xf32>
    %26 = arith.mulf %21, %25 : vector<8x32xf32>
    %27 = vector.broadcast %6 : vector<1x32xf32> to vector<8x32xf32>
    %28 = arith.mulf %26, %27 : vector<8x32xf32>
    %29 = vector.broadcast %8 : vector<1x32xf32> to vector<8x32xf32>
    %30 = arith.addf %28, %29 : vector<8x32xf32>
    %31 = arith.truncf %30 : vector<8x32xf32> to vector<8x32xbf16>
    %32 = vector.shape_cast %31 : vector<8x32xbf16> to vector<1x8x32xbf16>
    %33 = vector.shape_cast %32 : vector<1x8x32xbf16> to vector<1x8x32xbf16>
    %34 = vector.broadcast %33 : vector<1x8x32xbf16> to vector<4x8x32xbf16>
    %c0_13 = arith.constant 0 : index
    %c0_14 = arith.constant 0 : index
    %c0_15 = arith.constant 0 : index
    %c0_16 = arith.constant 0 : index
    %35 = vector.load %arg5[%c0_13, %c0_14, %c0_15, %c0_16] : memref<1x4x32x24xbf16, #tpu.memory_space<vmem>>, vector<1x4x32x24xbf16>
    %36 = vector.shape_cast %35 : vector<1x4x32x24xbf16> to vector<4x32x24xbf16>
    "tpu.trace_start"() <{level = 10 : i32, message = "hsd,hdf->hsf"}> : () -> ()
    %cst_17 = arith.constant dense<0.000000e+00> : vector<4x8x24xf32>
    %37 = tpu.matmul %34, %36, %cst_17 {dimension_numbers = #tpu.dot_dimension_numbers<[2], [1], [1], [2], [0, 0, 0, 1, 1, 2], [0], [0]>} : vector<4x8x32xbf16>, vector<4x32x24xbf16>, vector<4x8x24xf32> -> vector<4x8x24xf32>
    "tpu.trace_stop"() : () -> ()
    %c0_18 = arith.constant 0 : index
    %c0_19 = arith.constant 0 : index
    %c0_20 = arith.constant 0 : index
    %c0_21 = arith.constant 0 : index
    %38 = vector.load %arg6[%c0_18, %c0_19, %c0_20, %c0_21] : memref<1x4x1x24xf32, #tpu.memory_space<vmem>>, vector<1x4x1x24xf32>
    %39 = vector.shape_cast %38 : vector<1x4x1x24xf32> to vector<4x1x24xf32>
    %40 = vector.broadcast %39 : vector<4x1x24xf32> to vector<4x8x24xf32>
    %41 = arith.addf %37, %40 : vector<4x8x24xf32>
    %42 = vector.extract_strided_slice %41 {offsets = [0, 0, 0], sizes = [4, 8, 8], strides = [1, 1, 1]} : vector<4x8x24xf32> to vector<4x8x8xf32>
    %43 = vector.extract_strided_slice %41 {offsets = [0, 0, 8], sizes = [4, 8, 8], strides = [1, 1, 1]} : vector<4x8x24xf32> to vector<4x8x8xf32>
    %44 = vector.extract_strided_slice %41 {offsets = [0, 0, 16], sizes = [4, 8, 8], strides = [1, 1, 1]} : vector<4x8x24xf32> to vector<4x8x8xf32>
    %45 = arith.truncf %42 : vector<4x8x8xf32> to vector<4x8x8xbf16>
    %46 = arith.truncf %43 : vector<4x8x8xf32> to vector<4x8x8xbf16>
    "tpu.trace_start"() <{level = 10 : i32, message = "hqd,hkd->hqk"}> : () -> ()
    %cst_22 = arith.constant dense<0.000000e+00> : vector<4x8x8xf32>
    %47 = tpu.matmul %45, %46, %cst_22 {dimension_numbers = #tpu.dot_dimension_numbers<[2], [2], [1], [1], [0, 0, 0, 1, 1, 1], [0], [0]>} : vector<4x8x8xbf16>, vector<4x8x8xbf16>, vector<4x8x8xf32> -> vector<4x8x8xf32>
    "tpu.trace_stop"() : () -> ()
    %cst_23 = arith.constant 0.353553385 : f32
    %48 = vector.broadcast %cst_23 : f32 to vector<4x8x8xf32>
    %49 = arith.mulf %47, %48 : vector<4x8x8xf32>
    %c0_24 = arith.constant 0 : index
    %c0_25 = arith.constant 0 : index
    %50 = vector.load %arg4[%c0_24, %c0_25] : memref<8x8xf32, #tpu.memory_space<vmem>>, vector<8x8xf32>
    %51 = vector.shape_cast %50 : vector<8x8xf32> to vector<1x8x8xf32>
    %52 = vector.broadcast %51 : vector<1x8x8xf32> to vector<4x8x8xf32>
    %53 = arith.addf %49, %52 : vector<4x8x8xf32>
    %cst_26 = arith.constant dense<0xFF800000> : vector<4x8xf32>
    %54 = vector.multi_reduction <maximumf>, %53, %cst_26 [2] : vector<4x8x8xf32> to vector<4x8xf32>
    %55 = vector.shape_cast %54 : vector<4x8xf32> to vector<4x8x1xf32>
    %56 = vector.broadcast %55 : vector<4x8x1xf32> to vector<4x8x8xf32>
    %57 = arith.subf %53, %56 : vector<4x8x8xf32>
    %58 = math.exp %57 : vector<4x8x8xf32>
    %cst_27 = arith.constant dense<0.000000e+00> : vector<4x8xf32>
    %59 = vector.multi_reduction <add>, %58, %cst_27 [2] : vector<4x8x8xf32> to vector<4x8xf32>
    %60 = vector.shape_cast %59 : vector<4x8xf32> to vector<4x8x1xf32>
    %61 = tpu.reciprocal %60 {approx = true} : vector<4x8x1xf32> -> vector<4x8x1xf32>
    %62 = vector.broadcast %61 : vector<4x8x1xf32> to vector<4x8x8xf32>
    %63 = arith.mulf %58, %62 : vector<4x8x8xf32>
    %64 = arith.truncf %63 : vector<4x8x8xf32> to vector<4x8x8xbf16>
    %65 = arith.truncf %44 : vector<4x8x8xf32> to vector<4x8x8xbf16>
    "tpu.trace_start"() <{level = 10 : i32, message = "hqk,hkd->hqd"}> : () -> ()
    %cst_28 = arith.constant dense<0.000000e+00> : vector<4x8x8xf32>
    %66 = tpu.matmul %64, %65, %cst_28 {dimension_numbers = #tpu.dot_dimension_numbers<[2], [1], [1], [2], [0, 0, 0, 1, 1, 2], [0], [0]>} : vector<4x8x8xbf16>, vector<4x8x8xbf16>, vector<4x8x8xf32> -> vector<4x8x8xf32>
    "tpu.trace_stop"() : () -> ()
    %c0_29 = arith.constant 0 : index
    %c0_30 = arith.constant 0 : index
    %c0_31 = arith.constant 0 : index
    %c0_32 = arith.constant 0 : index
    %67 = vector.load %arg7[%c0_29, %c0_30, %c0_31, %c0_32] : memref<1x4x8x32xbf16, #tpu.memory_space<vmem>>, vector<1x4x8x32xbf16>
    %68 = vector.shape_cast %67 : vector<1x4x8x32xbf16> to vector<4x8x32xbf16>
    %c0_33 = arith.constant 0 : index
    %c0_34 = arith.constant 0 : index
    %c0_35 = arith.constant 0 : index
    %69 = vector.load %arg8[%c0_33, %c0_34, %c0_35] : memref<1x1x32xf32, #tpu.memory_space<vmem>>, vector<1x1x32xf32>
    %70 = vector.shape_cast %69 : vector<1x1x32xf32> to vector<1x32xf32>
    %71 = vector.extract_strided_slice %66 {offsets = [0, 0, 0], sizes = [1, 8, 8], strides = [1, 1, 1]} : vector<4x8x8xf32> to vector<1x8x8xf32>
    %72 = vector.shape_cast %71 : vector<1x8x8xf32> to vector<8x8xf32>
    %73 = arith.truncf %72 : vector<8x8xf32> to vector<8x8xbf16>
    %74 = vector.extract_strided_slice %68 {offsets = [0, 0, 0], sizes = [1, 8, 32], strides = [1, 1, 1]} : vector<4x8x32xbf16> to vector<1x8x32xbf16>
    %75 = vector.shape_cast %74 : vector<1x8x32xbf16> to vector<8x32xbf16>
    %cst_36 = arith.constant dense<0.000000e+00> : vector<8x32xf32>
    %76 = tpu.matmul %73, %75, %cst_36 {dimension_numbers = #tpu.dot_dimension_numbers<[1], [0], [0], [1], [0, 0, 1, 1], [], []>} : vector<8x8xbf16>, vector<8x32xbf16>, vector<8x32xf32> -> vector<8x32xf32>
    %77 = vector.broadcast %70 : vector<1x32xf32> to vector<8x32xf32>
    %78 = arith.addf %77, %76 : vector<8x32xf32>
    %79 = vector.extract_strided_slice %66 {offsets = [1, 0, 0], sizes = [1, 8, 8], strides = [1, 1, 1]} : vector<4x8x8xf32> to vector<1x8x8xf32>
    %80 = vector.shape_cast %79 : vector<1x8x8xf32> to vector<8x8xf32>
    %81 = arith.truncf %80 : vector<8x8xf32> to vector<8x8xbf16>
    %82 = vector.extract_strided_slice %68 {offsets = [1, 0, 0], sizes = [1, 8, 32], strides = [1, 1, 1]} : vector<4x8x32xbf16> to vector<1x8x32xbf16>
    %83 = vector.shape_cast %82 : vector<1x8x32xbf16> to vector<8x32xbf16>
    %cst_37 = arith.constant dense<0.000000e+00> : vector<8x32xf32>
    %84 = tpu.matmul %81, %83, %cst_37 {dimension_numbers = #tpu.dot_dimension_numbers<[1], [0], [0], [1], [0, 0, 1, 1], [], []>} : vector<8x8xbf16>, vector<8x32xbf16>, vector<8x32xf32> -> vector<8x32xf32>
    %85 = arith.addf %78, %84 : vector<8x32xf32>
    %86 = vector.extract_strided_slice %66 {offsets = [2, 0, 0], sizes = [1, 8, 8], strides = [1, 1, 1]} : vector<4x8x8xf32> to vector<1x8x8xf32>
    %87 = vector.shape_cast %86 : vector<1x8x8xf32> to vector<8x8xf32>
    %88 = arith.truncf %87 : vector<8x8xf32> to vector<8x8xbf16>
    %89 = vector.extract_strided_slice %68 {offsets = [2, 0, 0], sizes = [1, 8, 32], strides = [1, 1, 1]} : vector<4x8x32xbf16> to vector<1x8x32xbf16>
    %90 = vector.shape_cast %89 : vector<1x8x32xbf16> to vector<8x32xbf16>
    %cst_38 = arith.constant dense<0.000000e+00> : vector<8x32xf32>
    %91 = tpu.matmul %88, %90, %cst_38 {dimension_numbers = #tpu.dot_dimension_numbers<[1], [0], [0], [1], [0, 0, 1, 1], [], []>} : vector<8x8xbf16>, vector<8x32xbf16>, vector<8x32xf32> -> vector<8x32xf32>
    %92 = arith.addf %85, %91 : vector<8x32xf32>
    %93 = vector.extract_strided_slice %66 {offsets = [3, 0, 0], sizes = [1, 8, 8], strides = [1, 1, 1]} : vector<4x8x8xf32> to vector<1x8x8xf32>
    %94 = vector.shape_cast %93 : vector<1x8x8xf32> to vector<8x8xf32>
    %95 = arith.truncf %94 : vector<8x8xf32> to vector<8x8xbf16>
    %96 = vector.extract_strided_slice %68 {offsets = [3, 0, 0], sizes = [1, 8, 32], strides = [1, 1, 1]} : vector<4x8x32xbf16> to vector<1x8x32xbf16>
    %97 = vector.shape_cast %96 : vector<1x8x32xbf16> to vector<8x32xbf16>
    %cst_39 = arith.constant dense<0.000000e+00> : vector<8x32xf32>
    %98 = tpu.matmul %95, %97, %cst_39 {dimension_numbers = #tpu.dot_dimension_numbers<[1], [0], [0], [1], [0, 0, 1, 1], [], []>} : vector<8x8xbf16>, vector<8x32xbf16>, vector<8x32xf32> -> vector<8x32xf32>
    %99 = arith.addf %92, %98 : vector<8x32xf32>
    %100 = arith.addf %4, %99 : vector<8x32xf32>
    %c0_40 = arith.constant 0 : index
    %c0_41 = arith.constant 0 : index
    %c0_42 = arith.constant 0 : index
    %101 = vector.load %arg11[%c0_40, %c0_41, %c0_42] : memref<1x1x32xf32, #tpu.memory_space<vmem>>, vector<1x1x32xf32>
    %102 = vector.shape_cast %101 : vector<1x1x32xf32> to vector<1x32xf32>
    %c0_43 = arith.constant 0 : index
    %c0_44 = arith.constant 0 : index
    %c0_45 = arith.constant 0 : index
    %103 = vector.load %arg12[%c0_43, %c0_44, %c0_45] : memref<1x1x32xf32, #tpu.memory_space<vmem>>, vector<1x1x32xf32>
    %104 = vector.shape_cast %103 : vector<1x1x32xf32> to vector<1x32xf32>
    %cst_46 = arith.constant dense<0.000000e+00> : vector<8xf32>
    %105 = vector.multi_reduction <add>, %100, %cst_46 [1] : vector<8x32xf32> to vector<8xf32>
    %106 = vector.shape_cast %105 : vector<8xf32> to vector<8x1xf32>
    %cst_47 = arith.constant 3.200000e+01 : f32
    %107 = vector.broadcast %cst_47 : f32 to vector<8x1xf32>
    %108 = arith.divf %106, %107 : vector<8x1xf32>
    %109 = vector.broadcast %108 : vector<8x1xf32> to vector<8x32xf32>
    %110 = arith.subf %100, %109 : vector<8x32xf32>
    %111 = arith.mulf %110, %110 : vector<8x32xf32>
    %cst_48 = arith.constant dense<0.000000e+00> : vector<8xf32>
    %112 = vector.multi_reduction <add>, %111, %cst_48 [1] : vector<8x32xf32> to vector<8xf32>
    %113 = vector.shape_cast %112 : vector<8xf32> to vector<8x1xf32>
    %cst_49 = arith.constant 3.200000e+01 : f32
    %114 = vector.broadcast %cst_49 : f32 to vector<8x1xf32>
    %115 = arith.divf %113, %114 : vector<8x1xf32>
    %116 = vector.broadcast %108 : vector<8x1xf32> to vector<8x32xf32>
    %117 = arith.subf %100, %116 : vector<8x32xf32>
    %cst_50 = arith.constant 9.99999974E-6 : f32
    %118 = vector.broadcast %cst_50 : f32 to vector<8x1xf32>
    %119 = arith.addf %115, %118 : vector<8x1xf32>
    %120 = math.rsqrt %119 : vector<8x1xf32>
    %121 = vector.broadcast %120 : vector<8x1xf32> to vector<8x32xf32>
    %122 = arith.mulf %117, %121 : vector<8x32xf32>
    %123 = vector.broadcast %102 : vector<1x32xf32> to vector<8x32xf32>
    %124 = arith.mulf %122, %123 : vector<8x32xf32>
    %125 = vector.broadcast %104 : vector<1x32xf32> to vector<8x32xf32>
    %126 = arith.addf %124, %125 : vector<8x32xf32>
    %127 = arith.truncf %126 : vector<8x32xf32> to vector<8x32xbf16>
    %c0_51 = arith.constant 0 : index
    %c0_52 = arith.constant 0 : index
    %c0_53 = arith.constant 0 : index
    %128 = vector.load %arg13[%c0_51, %c0_52, %c0_53] : memref<1x32x64xbf16, #tpu.memory_space<vmem>>, vector<1x32x64xbf16>
    %129 = vector.shape_cast %128 : vector<1x32x64xbf16> to vector<32x64xbf16>
    %cst_54 = arith.constant dense<0.000000e+00> : vector<8x64xf32>
    %130 = tpu.matmul %127, %129, %cst_54 {dimension_numbers = #tpu.dot_dimension_numbers<[1], [0], [0], [1], [0, 0, 1, 1], [], []>} : vector<8x32xbf16>, vector<32x64xbf16>, vector<8x64xf32> -> vector<8x64xf32>
    %c0_55 = arith.constant 0 : index
    %c0_56 = arith.constant 0 : index
    %c0_57 = arith.constant 0 : index
    %131 = vector.load %arg14[%c0_55, %c0_56, %c0_57] : memref<1x1x64xf32, #tpu.memory_space<vmem>>, vector<1x1x64xf32>
    %132 = vector.shape_cast %131 : vector<1x1x64xf32> to vector<1x64xf32>
    %133 = vector.broadcast %132 : vector<1x64xf32> to vector<8x64xf32>
    %134 = arith.addf %130, %133 : vector<8x64xf32>
    %cst_58 = arith.constant 1.702000e+00 : f32
    %135 = vector.broadcast %cst_58 : f32 to vector<8x64xf32>
    %136 = arith.mulf %135, %134 : vector<8x64xf32>
    %137 = arith.negf %136 : vector<8x64xf32>
    %138 = math.exp %137 : vector<8x64xf32>
    %cst_59 = arith.constant 1.000000e+00 : f32
    %139 = vector.broadcast %cst_59 : f32 to vector<8x64xf32>
    %140 = arith.addf %139, %138 : vector<8x64xf32>
    %141 = arith.divf %139, %140 : vector<8x64xf32>
    %142 = arith.mulf %134, %141 : vector<8x64xf32>
    %143 = arith.truncf %142 : vector<8x64xf32> to vector<8x64xbf16>
    %c0_60 = arith.constant 0 : index
    %c0_61 = arith.constant 0 : index
    %c0_62 = arith.constant 0 : index
    %144 = vector.load %arg15[%c0_60, %c0_61, %c0_62] : memref<1x64x32xbf16, #tpu.memory_space<vmem>>, vector<1x64x32xbf16>
    %145 = vector.shape_cast %144 : vector<1x64x32xbf16> to vector<64x32xbf16>
    %cst_63 = arith.constant dense<0.000000e+00> : vector<8x32xf32>
    %146 = tpu.matmul %143, %145, %cst_63 {dimension_numbers = #tpu.dot_dimension_numbers<[1], [0], [0], [1], [0, 0, 1, 1], [], []>} : vector<8x64xbf16>, vector<64x32xbf16>, vector<8x32xf32> -> vector<8x32xf32>
    %c0_64 = arith.constant 0 : index
    %c0_65 = arith.constant 0 : index
    %c0_66 = arith.constant 0 : index
    %147 = vector.load %arg16[%c0_64, %c0_65, %c0_66] : memref<1x1x32xf32, #tpu.memory_space<vmem>>, vector<1x1x32xf32>
    %148 = vector.shape_cast %147 : vector<1x1x32xf32> to vector<1x32xf32>
    %149 = vector.broadcast %148 : vector<1x32xf32> to vector<8x32xf32>
    %150 = arith.addf %146, %149 : vector<8x32xf32>
    %151 = arith.addf %100, %150 : vector<8x32xf32>
    %c0_67 = arith.constant 0 : index
    %c0_68 = arith.constant 0 : index
    %c0_69 = arith.constant 0 : index
    %152 = vector.load %arg17[%c0_67, %c0_68, %c0_69] : memref<1x8x32xf32, #tpu.memory_space<vmem>>, vector<1x8x32xf32>
    %153 = vector.shape_cast %152 : vector<1x8x32xf32> to vector<8x32xf32>
    %154 = vector.shape_cast %151 : vector<8x32xf32> to vector<1x8x32xf32>
    tpu.vector_store %arg17[%c0_67, %c0_68, %c0_69], %154 {strides = array<i32>} : memref<1x8x32xf32, #tpu.memory_space<vmem>>, vector<1x8x32xf32>,
    return
  }
  func.func @transform_0(%arg0: i32, %arg1: i32) -> (i32, i32, i32) {
    %c0_i32 = arith.constant 0 : i32
    %c0_i32_0 = arith.constant 0 : i32
    %c0_i32_1 = arith.constant 0 : i32
    return %arg0, %c0_i32, %c0_i32_0 : i32, i32, i32
  }
  func.func @transform_1(%arg0: i32, %arg1: i32) -> (i32, i32, i32) {
    %c0_i32 = arith.constant 0 : i32
    %c0_i32_0 = arith.constant 0 : i32
    %c0_i32_1 = arith.constant 0 : i32
    %c0_i32_2 = arith.constant 0 : i32
    return %c0_i32, %c0_i32_0, %c0_i32_1 : i32, i32, i32
  }
  func.func @transform_2(%arg0: i32, %arg1: i32) -> (i32, i32) {
    %c0_i32 = arith.constant 0 : i32
    %c0_i32_0 = arith.constant 0 : i32
    %c0_i32_1 = arith.constant 0 : i32
    return %c0_i32, %c0_i32_0 : i32, i32
  }
  func.func @transform_3(%arg0: i32, %arg1: i32) -> (i32, i32, i32, i32) {
    %c0_i32 = arith.constant 0 : i32
    %c0_i32_0 = arith.constant 0 : i32
    %c0_i32_1 = arith.constant 0 : i32
    %c0_i32_2 = arith.constant 0 : i32
    return %arg1, %c0_i32, %c0_i32_0, %c0_i32_1 : i32, i32, i32, i32
  }
  func.func @transform_4(%arg0: i32, %arg1: i32) -> (i32, i32, i32, i32) {
    %c0_i32 = arith.constant 0 : i32
    %c0_i32_0 = arith.constant 0 : i32
    %c0_i32_1 = arith.constant 0 : i32
    %c0_i32_2 = arith.constant 0 : i32
    return %arg1, %c0_i32, %c0_i32_0, %c0_i32_1 : i32, i32, i32, i32
  }
  func.func @transform_5(%arg0: i32, %arg1: i32) -> (i32, i32, i32, i32) {
    %c0_i32 = arith.constant 0 : i32
    %c0_i32_0 = arith.constant 0 : i32
    %c0_i32_1 = arith.constant 0 : i32
    %c0_i32_2 = arith.constant 0 : i32
    return %arg1, %c0_i32, %c0_i32_0, %c0_i32_1 : i32, i32, i32, i32
  }
  func.func @transform_6(%arg0: i32, %arg1: i32) -> (i32, i32, i32) {
    %c0_i32 = arith.constant 0 : i32
    %c0_i32_0 = arith.constant 0 : i32
    %c0_i32_1 = arith.constant 0 : i32
    return %arg1, %c0_i32, %c0_i32_0 : i32, i32, i32
  }
  func.func @transform_7(%arg0: i32, %arg1: i32) -> (i32, i32, i32) {
    %c0_i32 = arith.constant 0 : i32
    %c0_i32_0 = arith.constant 0 : i32
    %c0_i32_1 = arith.constant 0 : i32
    return %arg1, %c0_i32, %c0_i32_0 : i32, i32, i32
  }
  func.func @transform_8(%arg0: i32, %arg1: i32) -> (i32, i32, i32) {
    %c0_i32 = arith.constant 0 : i32
    %c0_i32_0 = arith.constant 0 : i32
    %c0_i32_1 = arith.constant 0 : i32
    return %arg1, %c0_i32, %c0_i32_0 : i32, i32, i32
  }
  func.func @transform_9(%arg0: i32, %arg1: i32) -> (i32, i32, i32) {
    %c0_i32 = arith.constant 0 : i32
    %c0_i32_0 = arith.constant 0 : i32
    %c0_i32_1 = arith.constant 0 : i32
    return %arg1, %c0_i32, %c0_i32_0 : i32, i32, i32
  }
  func.func @transform_10(%arg0: i32, %arg1: i32) -> (i32, i32, i32) {
    %c0_i32 = arith.constant 0 : i32
    %c0_i32_0 = arith.constant 0 : i32
    %c0_i32_1 = arith.constant 0 : i32
    return %arg1, %c0_i32, %c0_i32_0 : i32, i32, i32
  }
  func.func @transform_11(%arg0: i32, %arg1: i32) -> (i32, i32, i32) {
    %c0_i32 = arith.constant 0 : i32
    %c0_i32_0 = arith.constant 0 : i32
    %c0_i32_1 = arith.constant 0 : i32
    return %arg1, %c0_i32, %c0_i32_0 : i32, i32, i32
  }
  func.func @transform_12(%arg0: i32, %arg1: i32) -> (i32, i32, i32) {
    %c0_i32 = arith.constant 0 : i32
    %c0_i32_0 = arith.constant 0 : i32
    %c0_i32_1 = arith.constant 0 : i32
    return %arg1, %c0_i32, %c0_i32_0 : i32, i32, i32
  }
  func.func @transform_13(%arg0: i32, %arg1: i32) -> (i32, i32, i32) {
    %c0_i32 = arith.constant 0 : i32
    %c0_i32_0 = arith.constant 0 : i32
    %c0_i32_1 = arith.constant 0 : i32
    return %arg1, %c0_i32, %c0_i32_0 : i32, i32, i32
  }
  func.func @transform_14(%arg0: i32, %arg1: i32) -> (i32, i32, i32) {
    %c0_i32 = arith.constant 0 : i32
    %c0_i32_0 = arith.constant 0 : i32
    %c0_i32_1 = arith.constant 0 : i32
    return %arg1, %c0_i32, %c0_i32_0 : i32, i32, i32
  }
  func.func @transform_15(%arg0: i32, %arg1: i32) -> (i32, i32, i32) {
    %c0_i32 = arith.constant 0 : i32
    %c0_i32_0 = arith.constant 0 : i32
    %c0_i32_1 = arith.constant 0 : i32
    return %arg0, %c0_i32, %c0_i32_0 : i32, i32, i32
  }
}

</mosaic_0001>

<bundles_post_ra>
// kernel: tpu_custom_call.1
= control target key start
LH: loop header
LB: loop body
LE: loop exit
PB: predicated region body
PF: predicated region fallthrough
CT: control target
= control target key end

     0   :  { %s2975_s0 = inlined_call_operand.vmem [shape: f32[2,8,32], index: 0, kind: input, shape index: {}]   ;;  %s2976_s1 = inlined_call_operand.vmem [shape: f32[1,8,32], index: 1, kind: input, shape index: {}]   ;;  %s2977_s2 = inlined_call_operand.vmem [shape: f32[8,8], index: 2, kind: input, shape index: {}]   ;;  %s2978_s3 = inlined_call_operand.vmem [shape: bf16[2,4,32,24], index: 3, kind: input, shape index: {}]   ;;  %s2979_s4 = inlined_call_operand.vmem [shape: f32[2,4,1,24], index: 4, kind: input, shape index: {}]   ;;  %s2980_s5 = inlined_call_operand.vmem [shape: bf16[2,4,8,32], index: 5, kind: input, shape index: {}]   ;;  %s2981_s6 = inlined_call_operand.vmem [shape: f32[2,1,32], index: 6, kind: input, shape index: {}]   ;;  %s2982_s7 = inlined_call_operand.vmem [shape: f32[2,1,32], index: 7, kind: input, shape index: {}]   ;;  %s2983_s8 = inlined_call_operand.vmem [shape: f32[2,1,32], index: 8, kind: input, shape index: {}]   ;;  %s2984_s9 = inlined_call_operand.vmem [shape: f32[2,1,32], index: 9, kind: input, shape index: {}]   ;;  %s2985_s10 = inlined_call_operand.vmem [shape: f32[2,1,32], index: 10, kind: input, shape index: {}]   ;;  %s2986_s11 = inlined_call_operand.vmem [shape: bf16[2,32,64], index: 11, kind: input, shape index: {}]   ;;  %s2987_s12 = inlined_call_operand.vmem [shape: f32[2,1,64], index: 12, kind: input, shape index: {}]   ;;  %s2988_s13 = inlined_call_operand.vmem [shape: bf16[2,64,32], index: 13, kind: input, shape index: {}]   ;;  %s2989_s14 = inlined_call_operand.vmem [shape: f32[2,1,32], index: 14, kind: input, shape index: {}]   ;;  %s2990_s15 = inlined_call_operand.hbm [shape: f32[2,8,32], index: 15, kind: output, shape index: {}]  }
   0x1   :  { %3008 = sst [smem:[#allocation20_spill]] %s2975_s0 }
   0x2   :  { %3009 = sst [smem:[#allocation21_spill]] %s2976_s1 }
   0x3   :  { %3010 = sst [smem:[#allocation22_spill]] %s2977_s2 }
   0x4   :  { %3011 = sst [smem:[#allocation23_spill]] %s2978_s3 }
   0x5   :  { %3012 = sst [smem:[#allocation24_spill]] %s2979_s4 }
   0x6   :  { %3013 = sst [smem:[#allocation25_spill]] %s2980_s5 }
   0x7   :  { %3014 = sst [smem:[#allocation26_spill]] %s2990_s15 }
   0x8   :  { %20 = vsyncpa [#allocation3], 0 }
   0x9   :  { %22 = vsyncpa [#allocation3 + $0x1], 0  ;;  %s2576_s18 = smov 0   ;;  %s2578_s19 = smov 0  }
   0xa   :  { %s2580_s20 = smov 0   ;;  %s2582_s21 = smov 0  }
   0xb   :  { %s2584_s22 = smov 0   ;;  %s2586_s23 = smov 0  }
   0xc   :  { %s2588_s24 = smov 0   ;;  %s2590_s25 = smov 0  }
   0xd LB: > { %3015 = sst [smem:[#allocation5_spill]] %s2461_s18  ;;  %s2047_s26 = sadd.s32 4294967295, %s2489_s25   ;;  %s2489_s25 = sphi %s2590_s25, %s28_s25   ;;  %s2485_s24 = sphi %s2588_s24, %s3058_s24   ;;  %s2481_s23 = sphi %s2586_s23, %s3057_s23   ;;  %s2477_s22 = sphi %s2584_s22, %s3056_s22   ;;  %s2473_s21 = sphi %s2582_s21, %s3055_s21   ;;  %s2469_s20 = sphi %s2580_s20, %s3054_s20   ;;  %s2465_s19 = sphi %s2578_s19, %s3053_s19   ;;  %s2461_s18 = sphi %s2576_s18, %s3052_s18  }
   0xe   : > { %3016 = sst [smem:[#allocation6_spill]] %s2465_s19  ;;  %s2048_s27 = sadd.s32 4294967294, %s2489_s25  }
   0xf   : > { %3017 = sst [smem:[#allocation7_spill]] %s2469_s20  ;;  %s37_s28 = sadd.s32 1, %s2481_s23 }
  0x10   : > { %3018 = sst [smem:[#allocation8_spill]] %s2473_s21  ;;  %p38_p0 = scmp.ge.s32.totalorder %s37_s28, 2 }
  0x11   : > { %3019 = sst [smem:[#allocation9_spill]] %s2477_s22  ;;  %s40_s29 = sadd.s32 1, %s2485_s24 }
  0x12   : > { %3020 = sst [smem:[#allocation10_spill]] %s2481_s23  ;;  %p437_p1 = scmp.ne.s32.totalorder %s2469_s20, %s2465_s19 }
  0x13   : > { %3021 = sst [smem:[#allocation11_spill]] %s2485_s24  ;;  %p438_p2 = scmp.eq.s32.totalorder %s2047_s26, 3 }
  0x14   : > { %3022 = sst [smem:[#allocation12_spill]] %s2489_s25  ;;  %s3060_s28 = smov (%p38_p0, %s37_s28), 0 }
  0x15   : > { %3023 = sst [smem:[#allocation13_spill]] %s3060_s28  ;;  %s3062_s29 = smov (!%p38_p0, %s40_s29), %s2485_s24 }
  0x16   : > { %p2625_p3 = por %p438_p2, %p437_p1  ;;  %p443_p4 = scmp.ne.s32.totalorder %s2465_s19, %s2461_s18 }
  0x17   : > { %p42_p5 = scmp.ge.s32.totalorder %s3062_s29, 2  ;;  %p444_p6 = scmp.eq.s32.totalorder %s2048_s27, 3 }
  0x18   : > { %s3024_s30 = scalar_select %p2625_p3, 1, 0 }
  0x19   : > { %p2051_p7 = scmp.ge.s32.totalorder %s2489_s25, 1  ;;  %p556_p8 = scmp.lt.s32.totalorder %s2489_s25, 5 }
  0x1a   : > { %3025 = sst [smem:[#allocation14_spill]] %s3024_s30  ;;  %s3064_s29 = smov (%p42_p5, %s3062_s29), 0 }
  0x1b   : > { %3026 = sst [smem:[#allocation15_spill]] %s3064_s29  ;;  %p2635_p9 = por %p444_p6, %p443_p4 }
  0x1c   : > { %p557_p10 = pnand %p2051_p7, %p556_p8  ;;  %s424_s17 = ssub.s32 %s2485_s24, %s3064_s29 }
  0x1d   : > { %s3027_s16 = scalar_select %p2635_p9, 1, 0 }
  0x1e   : > { %s427_s26 = sadd.s32 1, %s2469_s20  ;;  %p425_p11 = scmp.eq.s32.totalorder %s424_s17, 0 }
  0x1f   : > { %3028 = sst [smem:[#allocation16_spill]] %s3027_s16  ;;  %560 = sbr.rel (%p557_p10) target bundleno = 2375 (0x947), region = 80 }
  0x20   : > { %s2643_s28 = scalar_select %p425_p11, %s2469_s20, %s427_s26  }
  0x22   : > { %3029 = sst [smem:[#allocation17_spill]] %s2643_s28 }
  0x24   : > { %s2995_s27 = sand.u32 1, %s2465_s19   ;;  %p648_p12 = scmp.lt.s32.totalorder %s2477_s22, 1 }
  0x25   : > { %s2052_s23 = sshll.u32 %s2995_s27, 3  ;;  %p652_p13 = scmp.lt.s32.totalorder %s2473_s21, 1 }
  0x26   : > { %s649_s18 = scalar_select %p648_p12, %s2477_s22, 1 }
  0x27   : > { %s2652_s16 = scalar_select %p652_p13, %s2473_s21, 1 }
  0x28   : > { %s2053_s17 = sshll.u32 %s649_s18, 3  ;;  %s3030_s0 = sld [smem:[#allocation20_spill]] }
  0x29   : > { %s2112_s24 = sshll.u32 %s2652_s16, 6  ;;  %s3031_s3 = sld [smem:[#allocation23_spill]] }
  0x2a   : > { %s2056_s15 = sshll.u32 %s2652_s16, 2  ;;  %s3032_s4 = sld [smem:[#allocation24_spill]] }
  0x2b   : > { %s2113_s2 = sshll.u32 %s2652_s16, 4  ;;  %s3034_s5 = sld [smem:[#allocation25_spill]] }
  0x2c   : > { %s680_s18 = scalar_lea.vmem %s2985_s10, %s2652_s16  ;;  %s2698_s29 = scalar_lea.vmem %s2986_s11, %s2113_s2 }
  0x2d   : > { %s688_s20 = scalar_lea.vmem %s2987_s12, %s2652_s16  ;;  %s2115_s26 = sshll.u32 %s2652_s16, 5 }
  0x2e   : > { %s651_s27 = scalar_lea.vmem %s3030_s0, %s2053_s17  ;;  %s696_s19 = scalar_lea.vmem %s2989_s14, %s2652_s16 }
  0x2f   : > { %s2661_s25 = scalar_lea.vmem %s3031_s3, %s2112_s24  ;;  %s671_s24 = scalar_lea.vmem %s2982_s7, %s2652_s16 }
  0x30   : > { %s2667_s22 = scalar_lea.vmem %s3032_s4, %s2056_s15  ;;  %s2712_s4 = scalar_lea.vmem %s2988_s13, %s2115_s26 }
  0x31   : > { %3033 = sst [smem:[#allocation18_spill]] %s2667_s22  ;;  %s2673_s21 = scalar_lea.vmem %s3034_s5, %s2113_s2 }
  0x32   : > { %3035 = sst [smem:[#allocation19_spill]] %s2673_s21  ;;  %s2714_s22 = scalar_lea.vmem [#allocation2], %s2052_s23 }
  0x33   : > { %s3036_s1 = sld [smem:[#allocation8_spill]] }
  0x39   : > { %p2063_p0 = scmp.ne.s32.totalorder %s3036_s1, 0 }
  0x3a   : > { %s3037_s21 = sld [smem:[#allocation21_spill]] (!%p2063_p0) }
  0x3b   : > { %701 = sbr.rel (%p2063_p0) target bundleno = 69 (0x45), region = 84 }
  0x40   : > { %v702_v0 = vld [vmem:[%s651_s27] sm:$0xff]  ;;  %vm705_vm0 = vcmask 261120  }
  0x41   : > { %v703_v1 = vld [vmem:[%s3037_s21] sm:$0xff] }
  0x42   : > { %v704_v2 = vadd.f32 %v703_v1, %v702_v0 }
  0x44   : > { %706 = vst.msk [vmem:[%s2714_s22] sm:$0xff] %vm705_vm0, %v704_v2 }
  0x45 PF: > { %vm710_vm1 = vcmask 261120   ;;  %v2359_v10 = vld [vmem:[%s2661_s25 + $0x8] sm:$0xff]   ;;  %v2360_v11 = vld [vmem:[%s2661_s25 + $0x18] sm:$0xff]   ;;  %v2491_v12 = vmov 0.0   ;;  %v2361_v13 = vld [vmem:[%s2661_s25] sm:$0xff]   ;;  %vm2492_vm2 = vmmov 0   ;;  %s3038_s0 = scalar_lea.vmem %s2983_s8, %s2652_s16  ;;  %s3042_s21 = scalar_lea.vmem %s2981_s6, %s2652_s16 }
  0x46   : > { %2160 = vmatprep.subr.bf16.mxu0 %v2491_v12  ;;  %2168 = vmatprep.subr.bf16.mxu1 %v2491_v12  ;;  %v2362_v14 = vld [vmem:[%s2661_s25 + $0x10] sm:$0xff]   ;;  %v2064_v19 = vld [vmem:[%s671_s24] ss:$0 sm:$0xff]  ;;  %v2363_v24 = vld [vmem:[%s2661_s25 + $0x28] sm:$0xff]   ;;  %s3039_s3 = sld [smem:[#allocation18_spill]]  ;;  %vm1002_vm3 = vcmask 64512   ;;  %s3043_s26 = scalar_lea.vmem %s2984_s9, %s2652_s16 }
  0x47   : > { %2161 = vmatpush3.bf16.msra.mxu0 %v2359_v10  ;;  %2169 = vmatpush3.bf16.msra.mxu1 %v2360_v11  ;;  %v2065_v21 = vld [vmem:[%s3038_s0] ss:$0 sm:$0xff]  ;;  %v2364_v25 = vld [vmem:[%s2661_s25 + $0x38] sm:$0xff]   ;;  %v2366_v28 = vld [vmem:[%s2661_s25 + $0x30] sm:$0xff]   ;;  %s3040_s15 = sld [smem:[#allocation22_spill]]  ;;  %s2494_s30 = smov 112  }
  0x48   : > { %2162 = vmatprep.subr.bf16.mxu0 %v2491_v12  ;;  %2170 = vmatprep.subr.bf16.mxu1 %v2491_v12  ;;  %v2365_v27 = vld [vmem:[%s2661_s25 + $0x20] sm:$0xff]   ;;  %s2493_s25 = smov 120   ;;  %vm1258_vm4 = vcmask 1043456   ;;  %s3041_s1 = sld [smem:[#allocation19_spill]]  ;;  %vm1794_vm5 = vcmask 523264  }
  0x49   : > { %2164 = vmatprep.mubr.msk.bf16.mxu0 %vm2492_vm2, %v2491_v12  ;;  %2172 = vmatprep.mubr.msk.bf16.mxu1 %vm2492_vm2, %v2491_v12  ;;  %s3047_s2 = sld [smem:[#allocation26_spill]]  ;;  %s2495_s23 = smov [#allocation2]  }
  0x4a   : > { %s2401_s27 = sshll.u32 %s2495_s23, 4  ;;  %s2402_s27 = int_to_ptr.vmem [resolvable:$false] %s2401_s27 }
  0x4b   : > { %v2722_v3 = vld [vmem:[%s2714_s22] sm:$0xff]  ;;  %2163 = vmatpush3.bf16.msra.mxu0 %v2361_v13  ;;  %2171 = vmatpush3.bf16.msra.mxu1 %v2362_v14 }
  0x4c   : > { %v711_v4 = vsel %vm710_vm1, %v2722_v3, 0.0  ;;  %2176 = vmatprep.subr.bf16.mxu0 %v2491_v12  ;;  %2184 = vmatprep.subr.bf16.mxu1 %v2491_v12  ;;  %v2066_v29 = vld [vmem:[%s3039_s3] ss:$0 sm:$0xff]  ;;  %v2067_v31 = vld [vmem:[%s3039_s3 + $0x1] ss:$0 sm:$0xff] }
  0x4d   : > { %712 = vadd.xlane.f32.xlu0 %v711_v4  ;;  %v2068_v42 = vld [vmem:[%s3039_s3 + $0x2] ss:$0 sm:$0xff]  ;;  %v2069_v43 = vld [vmem:[%s3039_s3 + $0x3] ss:$0 sm:$0xff]  ;;  %s3044_s3 = sld [smem:[#allocation9_spill]] }
  0x4e   : > { %v1200_v2 = vld [vmem:[%s3040_s15] sm:$0xff]  ;;  %s1854_s15 = sshll.u32 %s2714_s22, 4  ;;  %s2921_s15 = int_to_ptr.vmem [resolvable:$true] %s1854_s15 }
  0x4f   : > { %p2404_p5 = scmp.lt.s32.totalorder %s2921_s15, %s2402_s27 }
  0x53   : > { %s2109_s28 = sshll.u32 %s3044_s3, 7 }
  0x54   : > { %s2919_s5 = scalar_lea.hbm %s3047_s2, %s2109_s28 }
  0xd6   : > { %v713_v5 = vpop.xlane.xlu0 %712 }
  0xd7   : > { %v715_v6 = vmul.f32 0.03125, %v713_v5 }
  0xd9   : > { %v716_v7 = vsub.f32 %v2722_v3, %v715_v6 }
  0xdb   : > { %v717_v8 = vmul.f32 %v716_v7, %v716_v7 }
  0xdd   : > { %v718_v9 = vsel %vm710_vm1, %v717_v8, 0.0 }
  0xde   : > { %719 = vadd.xlane.f32.xlu0 %v718_v9 }
 0x167   : > { %v720_v15 = vpop.xlane.xlu0 %719 }
 0x168   : > { %v721_v16 = vmul.f32 0.03125, %v720_v15 }
 0x16a   : > { %v722_v17 = vadd.f32 1e-05, %v721_v16 }
 0x16c   : > { %2373 = vrsqrt.f32 %v722_v17 }
 0x179   : > { %v2374_v18 = vpop.eup %2373 }
 0x17a   : > { %v724_v20 = vmul.f32 %v2374_v18, %v716_v7 }
 0x17c   : > { %v731_v22 = vmul.f32 %v2064_v19, %v724_v20 }
 0x17e   : > { %v738_v23 = vadd.f32 %v2065_v21, %v731_v22 }
 0x180   : > { %v739_v26 = vpack.c.bf16 %v738_v23, %v738_v23 }
 0x182   : > { %2165 = vmatmul.mubr.msk.bf16.vlgmr.msra.gmra.mxu0 %vm710_vm1, %v739_v26  ;;  %2173 = vmatmul.mubr.msk.bf16.vlgmr.msra.gmra.mxu1 %vm710_vm1, %v739_v26 }
 0x183   : > { %2177 = vmatpush3.bf16.msra.mxu0 %v2363_v24  ;;  %2185 = vmatpush3.bf16.msra.mxu1 %v2364_v25 }
 0x184   : > { %2178 = vmatprep.subr.bf16.mxu0 %v2491_v12  ;;  %2186 = vmatprep.subr.bf16.mxu1 %v2491_v12 }
 0x185   : > { %2180 = vmatprep.mubr.msk.bf16.mxu0 %vm2492_vm2, %v2491_v12  ;;  %2188 = vmatprep.mubr.msk.bf16.mxu1 %vm2492_vm2, %v2491_v12 }
 0x187   : > { %2179 = vmatpush3.bf16.msra.mxu0 %v2365_v27  ;;  %2187 = vmatpush3.bf16.msra.mxu1 %v2366_v28 }
 0x188   : > { %2192 = vmatprep.subr.bf16.mxu0 %v2491_v12  ;;  %2198 = vmatprep.subr.bf16.mxu1 %v2491_v12 }
 0x18a   : > { %2181 = vmatmul.mubr.msk.bf16.vlgmr.msra.gmra.mxu0 %vm710_vm1, %v739_v26  ;;  %2189 = vmatmul.mubr.msk.bf16.vlgmr.msra.gmra.mxu1 %vm710_vm1, %v739_v26 }
 0x18b   : > { %2194 = vmatprep.mubr.msk.bf16.mxu0 %vm2492_vm2, %v2491_v12  ;;  %2200 = vmatprep.mubr.msk.bf16.mxu1 %vm2492_vm2, %v2491_v12 }
 0x242   : > { %v833_v30 = vpop.f32.mrf.mxu0  ;;  %v885_v32 = vpop.f32.mrf.mxu1 }
 0x243   : > { %v834_v33 = vadd.f32 %v2066_v29, %v833_v30  ;;  %v886_v37 = vadd.f32 %v2067_v31, %v885_v32 }
 0x244   : > { %v2166_v34 = vpop.f32.mrf.mxu0  ;;  %v2174_v35 = vpop.f32.mrf.mxu1 }
 0x245   : > { %v2774_v36 = vpack.c.bf16 %v834_v33, %v834_v33  ;;  %v2779_v44 = vpack.c.bf16 %v886_v37, %v886_v37 }
 0x246   : > { %v836_v38 = vpop.f32.mrf.mxu0  ;;  %v888_v39 = vpop.f32.mrf.mxu1 }
 0x247   : > { %1000 = vrot.lane.b32.xlu1 %v2774_v36, %s2493_s25 }
 0x248   : > { %v2167_v40 = vpop.f32.mrf.mxu0  ;;  %v2175_v41 = vpop.f32.mrf.mxu1 }
 0x24a   : > { %v937_v45 = vpop.f32.mrf.mxu0  ;;  %v989_v46 = vpop.f32.mrf.mxu1 }
 0x24b   : > { %v938_v47 = vadd.f32 %v2068_v42, %v937_v45  ;;  %v990_v48 = vadd.f32 %v2069_v43, %v989_v46  ;;  %1050 = vrot.lane.b32.xlu1 %v2779_v44, %s2493_s25 }
 0x24c   : > { %v2182_v49 = vpop.f32.mrf.mxu0  ;;  %v2190_v50 = vpop.f32.mrf.mxu1 }
 0x24d   : > { %v2782_v51 = vpack.c.bf16 %v938_v47, %v938_v47  ;;  %v2784_v52 = vpack.c.bf16 %v990_v48, %v990_v48 }
 0x24e   : > { %v940_v53 = vpop.f32.mrf.mxu0  ;;  %v992_v54 = vpop.f32.mrf.mxu1 }
 0x24f   : > { %1148 = vrot.lane.b32.xlu1 %v2784_v52, %s2493_s25  ;;  %1099 = vrot.lane.b32.xlu0 %v2782_v51, %s2493_s25 }
 0x250   : > { %v2183_v55 = vpop.f32.mrf.mxu0  ;;  %v2191_v56 = vpop.f32.mrf.mxu1 }
 0x2b9   : > { %v1001_v57 = vpop.permute.xlu1 %1000 }
 0x2ba   : > { %v1007_v58 = vsel %vm1002_vm3, %v1001_v57, 0 }
 0x2bb   : > { %2193 = vmatpush3.bf16.xpose.msra.mxu0 %v1007_v58 }
 0x2bc   : > { %2204 = vmatprep.subr.bf16.mxu0 %v2491_v12 }
 0x2bd   : > { %v1051_v59 = vpop.permute.xlu1 %1050 }
 0x2be   : > { %v1056_v60 = vsel %vm1002_vm3, %v1051_v59, 0 }
 0x2bf   : > { %2199 = vmatpush3.bf16.xpose.msra.mxu1 %v1056_v60 }
 0x2c0   : > { %2210 = vmatprep.subr.bf16.mxu1 %v2491_v12 }
 0x2c1   : > { %v1100_v61 = vpop.permute.xlu0 %1099  ;;  %v1149_v63 = vpop.permute.xlu1 %1148 }
 0x2c2   : > { %v1105_v62 = vsel %vm1002_vm3, %v1100_v61, 0  ;;  %2195 = vmatmul.mubr.msk.bf16.vlgmr.msra.gmra.mxu0 %vm1002_vm3, %v2774_v36  ;;  %v1154_v0 = vsel %vm1002_vm3, %v1149_v63, 0 }
 0x2c3   : > { %2205 = vmatpush3.bf16.xpose.msra.mxu0 %v1105_v62  ;;  %2206 = vmatprep.mubr.msk.bf16.mxu0 %vm2492_vm2, %v2491_v12 }
 0x2c4   : > { %2216 = vmatprep.subr.bf16.mxu0 %v2491_v12 }
 0x2c6   : > { %2201 = vmatmul.mubr.msk.bf16.vlgmr.msra.gmra.mxu1 %vm1002_vm3, %v2779_v44 }
 0x2c7   : > { %2211 = vmatpush3.bf16.xpose.msra.mxu1 %v1154_v0  ;;  %2212 = vmatprep.mubr.msk.bf16.mxu1 %vm2492_vm2, %v2491_v12 }
 0x2c8   : > { %2222 = vmatprep.subr.bf16.mxu1 %v2491_v12 }
 0x2ca   : > { %2207 = vmatmul.mubr.msk.bf16.vlgmr.msra.gmra.mxu0 %vm1002_vm3, %v2782_v51 }
 0x2cb   : > { %2218 = vmatprep.mubr.msk.bf16.mxu0 %vm2492_vm2, %v2491_v12 }
 0x2ce   : > { %2213 = vmatmul.mubr.msk.bf16.vlgmr.msra.gmra.mxu1 %vm1002_vm3, %v2784_v52 }
 0x2cf   : > { %2224 = vmatprep.mubr.msk.bf16.mxu1 %vm2492_vm2, %v2491_v12 }
 0x382   : > { %v1043_v1 = vpop.f32.mrf.mxu0 }
 0x383   : > { %v1196_v4 = vmul.f32 0.35355338, %v1043_v1 }
 0x384   : > { %v2196_v5 = vpop.f32.mrf.mxu0 }
 0x385   : > { %v1201_v6 = vadd.f32 %v1200_v2, %v1196_v4 }
 0x386   : > { %v1046_v7 = vpop.f32.mrf.mxu0  ;;  %v1092_v8 = vpop.f32.mrf.mxu1 }
 0x387   : > { %v1197_v9 = vmul.f32 0.35355338, %v1092_v8  ;;  %v1205_v10 = vsel %vm1002_vm3, %v1201_v6, -inf  ;;  %v1446_v7 = vld [vmem:[%s3041_s1] sm:$0xf] }
 0x388   : > { %v2202_v11 = vpop.f32.mrf.mxu1  ;;  %1206 = vmax.xlane.f32.xlu1 %v1205_v10  ;;  %v2197_v13 = vpop.f32.mrf.mxu0 }
 0x389   : > { %v1202_v14 = vadd.f32 %v1200_v2, %v1197_v9  ;;  %v1456_v11 = vsel %vm1258_vm4, %v1446_v7, 0  ;;  %v2367_v7 = vld [vmem:[%s2698_s29 + $0x8] sm:$0xff]  }
 0x38a   : > { %v1095_v15 = vpop.f32.mrf.mxu1  ;;  %v1141_v16 = vpop.f32.mrf.mxu0 }
 0x38b   : > { %v1198_v17 = vmul.f32 0.35355338, %v1141_v16  ;;  %v1208_v18 = vsel %vm1002_vm3, %v1202_v14, -inf  ;;  %v1447_v16 = vld [vmem:[%s3041_s1 + $0x4] sm:$0xf] }
 0x38c   : > { %v2203_v19 = vpop.f32.mrf.mxu1  ;;  %1209 = vmax.xlane.f32.xlu0 %v1208_v18  ;;  %v2208_v20 = vpop.f32.mrf.mxu0  ;;  %v1448_v18 = vld [vmem:[%s3041_s1 + $0x8] sm:$0xf] }
 0x38d   : > { %v1203_v21 = vadd.f32 %v1200_v2, %v1198_v17  ;;  %v1510_v17 = vsel %vm1258_vm4, %v1447_v16, 0 }
 0x38e   : > { %v1144_v22 = vpop.f32.mrf.mxu0  ;;  %v1190_v23 = vpop.f32.mrf.mxu1 }
 0x38f   : > { %v1199_v24 = vmul.f32 0.35355338, %v1190_v23  ;;  %v1211_v25 = vsel %vm1002_vm3, %v1203_v21, -inf  ;;  %v1449_v23 = vld [vmem:[%s3041_s1 + $0xc] sm:$0xf] }
 0x390   : > { %v2214_v26 = vpop.f32.mrf.mxu1  ;;  %1212 = vmax.xlane.f32.xlu1 %v1211_v25  ;;  %v2209_v27 = vpop.f32.mrf.mxu0 }
 0x391   : > { %v1204_v28 = vadd.f32 %v1200_v2, %v1199_v24  ;;  %v1606_v27 = vsel %vm1258_vm4, %v1449_v23, 0  ;;  %v2097_v23 = vld [vmem:[%s688_s20] ss:$0 sm:$0xff] }
 0x392   : > { %v1193_v29 = vpop.f32.mrf.mxu1 }
 0x393   : > { %v1214_v30 = vsel %vm1002_vm3, %v1204_v28, -inf }
 0x394   : > { %v2215_v31 = vpop.f32.mrf.mxu1  ;;  %1215 = vmax.xlane.f32.xlu1 %v1214_v30 }
 0x3a2   : > { %1253 = vrot.lane.b32.xlu0 %v2774_v36, %s2494_s30 }
 0x3a5   : > { %1302 = vrot.lane.b32.xlu1 %v2779_v44, %s2494_s30 }
 0x411   : > { %v1207_v32 = vpop.xlane.xlu1 %1206 }
 0x412   : > { %v1217_v33 = vsub.f32 %v1201_v6, %v1207_v32 }
 0x414   : > { %v1221_v34 = vmul.f32 1.442695, %v1217_v33 }
 0x415   : > { %v1210_v35 = vpop.xlane.xlu0 %1209 }
 0x416   : > { %2375 = vpow2.f32 %v1221_v34  ;;  %v1218_v37 = vsub.f32 %v1202_v14, %v1210_v35 }
 0x418   : > { %v1223_v38 = vmul.f32 1.442695, %v1218_v37 }
 0x419   : > { %v1254_v39 = vpop.permute.xlu0 %1253  ;;  %v1213_v40 = vpop.xlane.xlu1 %1212 }
 0x41a   : > { %2377 = vpow2.f32 %v1223_v38  ;;  %v1260_v41 = vsel %vm1258_vm4, %v1254_v39, 0  ;;  %v1219_v42 = vsub.f32 %v1203_v21, %v1213_v40  ;;  %v1558_v21 = vsel %vm1258_vm4, %v1448_v18, 0 }
 0x41b   : > { %2217 = vmatpush3.bf16.msra.mxu0 %v1260_v41 }
 0x41c   : > { %v1225_v43 = vmul.f32 1.442695, %v1219_v42  ;;  %2228 = vmatprep.subr.bf16.mxu0 %v2491_v12 }
 0x41d   : > { %v1216_v36 = vpop.xlane.xlu1 %1215 }
 0x41e   : > { %2379 = vpow2.f32 %v1225_v43  ;;  %v1220_v44 = vsub.f32 %v1204_v28, %v1216_v36 }
 0x420   : > { %v1227_v45 = vmul.f32 1.442695, %v1220_v44  ;;  %v2091_v44 = vld [vmem:[%s3042_s21] ss:$0 sm:$0xff]  ;;  %s2397_s21 = scalar_lea.vmem %s2921_s15, 128 }
 0x421   : > { %v1303_v46 = vpop.permute.xlu1 %1302  ;;  %p2398_p1 = scmp.ne.s32.totalorder %s2921_s15, %s2397_s21 }
 0x422   : > { %2381 = vpow2.f32 %v1227_v45  ;;  %v1308_v47 = vsel %vm1258_vm4, %v1303_v46, 0 }
 0x423   : > { %v2376_v48 = vpop.eup %2375  ;;  %2223 = vmatpush3.bf16.msra.mxu1 %v1308_v47  ;;  %p2399_p2 = pnand %p2398_p1, %p2625_p3 }
 0x424   : > { %v1229_v49 = vsel %vm1002_vm3, %v2376_v48, 0.0  ;;  %2234 = vmatprep.subr.bf16.mxu1 %v2491_v12 }
 0x425   : > { %1230 = vadd.xlane.f32.xlu1 %v1229_v49  ;;  %p2400_p4 = pneg %p2399_p2 }
 0x427   : > { %v2378_v50 = vpop.eup %2377 }
 0x428   : > { %v1232_v53 = vsel %vm1002_vm3, %v2378_v50, 0.0 }
 0x429   : > { %1233 = vadd.xlane.f32.xlu1 %v1232_v53 }
 0x42b   : > { %v2380_v54 = vpop.eup %2379 }
 0x42c   : > { %v1235_v55 = vsel %vm1002_vm3, %v2380_v54, 0.0 }
 0x42d   : > { %1236 = vadd.xlane.f32.xlu0 %v1235_v55 }
 0x42f   : > { %v2382_v56 = vpop.eup %2381 }
 0x430   : > { %v1238_v57 = vsel %vm1002_vm3, %v2382_v56, 0.0 }
 0x431   : > { %1239 = vadd.xlane.f32.xlu1 %v1238_v57 }
 0x442   : > { %1350 = vrot.lane.b32.xlu1 %v2782_v51, %s2494_s30 }
 0x443   : > { %1398 = vrot.lane.b32.xlu0 %v2784_v52, %s2494_s30 }
 0x4ae   : > { %v1231_v58 = vpop.xlane.xlu1 %1230 }
 0x4af   : > { %2383 = vrcp.f32 %v1231_v58 }
 0x4b2   : > { %v1234_v59 = vpop.xlane.xlu1 %1233 }
 0x4b3   : > { %2385 = vrcp.f32 %v1234_v59 }
 0x4b6   : > { %v1237_v60 = vpop.xlane.xlu0 %1236 }
 0x4b7   : > { %2387 = vrcp.f32 %v1237_v60 }
 0x4ba   : > { %v1240_v61 = vpop.xlane.xlu1 %1239  ;;  %v1399_v52 = vpop.permute.xlu0 %1398 }
 0x4bb   : > { %2389 = vrcp.f32 %v1240_v61  ;;  %v1404_v8 = vsel %vm1258_vm4, %v1399_v52, 0 }
 0x4bc   : > { %v2384_v62 = vpop.eup %2383 }
 0x4bd   : > { %v1245_v63 = vmul.f32 %v2384_v62, %v2376_v48 }
 0x4be   : > { %v1351_v0 = vpop.permute.xlu1 %1350 }
 0x4bf   : > { %v1356_v1 = vsel %vm1258_vm4, %v1351_v0, 0  ;;  %v1249_v2 = vpack.c.bf16 %v1245_v63, %v1245_v63 }
 0x4c0   : > { %v2386_v4 = vpop.eup %2385 }
 0x4c1   : > { %2219 = vmatmul.mubr.msk.bf16.vlgmr.msra.gmra.mxu0 %vm1002_vm3, %v1249_v2  ;;  %v1246_v51 = vmul.f32 %v2386_v4, %v2378_v50 }
 0x4c2   : > { %2229 = vmatpush3.bf16.msra.mxu0 %v1356_v1  ;;  %2230 = vmatprep.mubr.msk.bf16.mxu0 %vm2492_vm2, %v2491_v12 }
 0x4c3   : > { %v1250_v5 = vpack.c.bf16 %v1246_v51, %v1246_v51  ;;  %2240 = vmatprep.subr.bf16.mxu0 %v2491_v12 }
 0x4c4   : > { %v2388_v6 = vpop.eup %2387 }
 0x4c5   : > { %2225 = vmatmul.mubr.msk.bf16.vlgmr.msra.gmra.mxu1 %vm1002_vm3, %v1250_v5  ;;  %v1247_v9 = vmul.f32 %v2388_v6, %v2380_v54 }
 0x4c6   : > { %2235 = vmatpush3.bf16.msra.mxu1 %v1404_v8  ;;  %2236 = vmatprep.mubr.msk.bf16.mxu1 %vm2492_vm2, %v2491_v12  ;;  %v2368_v8 = vld [vmem:[%s2698_s29] sm:$0xff]  }
 0x4c7   : > { %v1251_v10 = vpack.c.bf16 %v1247_v9, %v1247_v9  ;;  %2246 = vmatprep.subr.bf16.mxu1 %v2491_v12 }
 0x4c8   : > { %v2390_v13 = vpop.eup %2389 }
 0x4c9   : > { %2231 = vmatmul.mubr.msk.bf16.vlgmr.msra.gmra.mxu0 %vm1002_vm3, %v1251_v10  ;;  %v1248_v14 = vmul.f32 %v2390_v13, %v2382_v56  ;;  %v2095_v13 = vld [vmem:[%s3043_s26] ss:$0 sm:$0xff]  ;;  %s2403_s26 = scalar_lea.vmem %s2402_s27, 256 }
 0x4ca   : > { %2241 = vmatpush3.bf16.msra.mxu0 %v1456_v11  ;;  %2242 = vmatprep.mubr.msk.bf16.mxu0 %vm2492_vm2, %v2491_v12  ;;  %p2405_p6 = scmp.lt.s32.totalorder %s2403_s26, %s2397_s21 }
 0x4cb   : > { %v1252_v15 = vpack.c.bf16 %v1248_v14, %v1248_v14  ;;  %2252 = vmatprep.subr.bf16.mxu0 %v2491_v12 }
 0x4cc   : > { %p2406_p7 = por %p2405_p6, %p2404_p5 }
 0x4cd   : > { %2237 = vmatmul.mubr.msk.bf16.vlgmr.msra.gmra.mxu1 %vm1002_vm3, %v1252_v15  ;;  %v2096_v15 = vld [vmem:[%s680_s18] ss:$0 sm:$0xff] }
 0x4ce   : > { %2248 = vmatprep.mubr.msk.bf16.mxu1 %vm2492_vm2, %v2491_v12  ;;  %2247 = vmatpush3.bf16.msra.mxu1 %v1510_v17  ;;  %p2407_p8 = pnand %p2406_p7, %p2400_p4 }
 0x4cf   : > { %2258 = vmatprep.subr.bf16.mxu1 %v2491_v12 }
 0x581   : > { %v1296_v19 = vpop.f32.mrf.mxu0 }
 0x582   : > { %v1451_v20 = vpack.c.bf16 %v1296_v19, %v1296_v19  ;;  %v2369_v19 = vld [vmem:[%s2712_s4 + $0x18] sm:$0xff]  }
 0x583   : > { %v2220_v22 = vpop.f32.mrf.mxu0 }
 0x584   : > { %2243 = vmatmul.mubr.msk.bf16.vlgmr.msra.gmra.mxu0 %vm1002_vm3, %v1451_v20  ;;  %v2370_v20 = vld [vmem:[%s2712_s4 + $0x10] sm:$0xff]   ;;  %v2372_v22 = vld [vmem:[%s2712_s4] sm:$0xff]  }
 0x585   : > { %v1299_v24 = vpop.f32.mrf.mxu0  ;;  %v1344_v25 = vpop.f32.mrf.mxu1  ;;  %2253 = vmatpush3.bf16.msra.mxu0 %v1558_v21  ;;  %2254 = vmatprep.mubr.msk.bf16.mxu0 %vm2492_vm2, %v2491_v12  ;;  %v2371_v21 = vld [vmem:[%s2712_s4 + $0x8] sm:$0xff]   ;;  %s3045_s4 = sld [smem:[#allocation6_spill]] }
 0x586   : > { %v1505_v26 = vpack.c.bf16 %v1344_v25, %v1344_v25  ;;  %2264 = vmatprep.subr.bf16.mxu0 %v2491_v12 }
 0x587   : > { %v2221_v28 = vpop.f32.mrf.mxu0  ;;  %v2226_v29 = vpop.f32.mrf.mxu1 }
 0x588   : > { %2249 = vmatmul.mubr.msk.bf16.vlgmr.msra.gmra.mxu1 %vm1002_vm3, %v1505_v26 }
 0x589   : > { %v1347_v30 = vpop.f32.mrf.mxu1  ;;  %v1392_v31 = vpop.f32.mrf.mxu0  ;;  %2259 = vmatpush3.bf16.msra.mxu1 %v1606_v27  ;;  %2260 = vmatprep.mubr.msk.bf16.mxu1 %vm2492_vm2, %v2491_v12 }
 0x58a   : > { %v1553_v32 = vpack.c.bf16 %v1392_v31, %v1392_v31  ;;  %2272 = vmatprep.subr.bf16.mxu1 %v2491_v12 }
 0x58b   : > { %v2227_v33 = vpop.f32.mrf.mxu1  ;;  %v2232_v34 = vpop.f32.mrf.mxu0  ;;  %s3048_s16 = sand.u32 1, %s3045_s4  }
 0x58c   : > { %2255 = vmatmul.mubr.msk.bf16.vlgmr.msra.gmra.mxu0 %vm1002_vm3, %v1553_v32 }
 0x58d   : > { %v1395_v35 = vpop.f32.mrf.mxu0  ;;  %v1440_v37 = vpop.f32.mrf.mxu1  ;;  %2268 = vmatprep.mubr.msk.bf16.mxu0 %vm2492_vm2, %v2491_v12  ;;  %2265 = vmatpush3.bf16.msra.mxu0 %v2367_v7 }
 0x58e   : > { %v1601_v38 = vpack.c.bf16 %v1440_v37, %v1440_v37  ;;  %2266 = vmatprep.subr.bf16.mxu0 %v2491_v12  ;;  %v2102_v35 = vld [vmem:[%s696_s19] ss:$0 sm:$0xff]  ;;  %s1841_s19 = scalar_lea.sflag [#allocation3], %s3048_s16 }
 0x58f   : > { %v2233_v39 = vpop.f32.mrf.mxu0  ;;  %v2238_v40 = vpop.f32.mrf.mxu1 }
 0x590   : > { %2261 = vmatmul.mubr.msk.bf16.vlgmr.msra.gmra.mxu1 %vm1002_vm3, %v1601_v38 }
 0x591   : > { %v1443_v41 = vpop.f32.mrf.mxu1  ;;  %2280 = vmatprep.mubr.msk.bf16.mxu1 %vm2492_vm2, %v2491_v12  ;;  %2267 = vmatpush3.bf16.msra.mxu0 %v2368_v8 }
 0x592   : > { %2273 = vmatpush3.bf16.msra.mxu1 %v2369_v19 }
 0x593   : > { %v2239_v42 = vpop.f32.mrf.mxu1  ;;  %2274 = vmatprep.subr.bf16.mxu1 %v2491_v12 }
 0x596   : > { %2275 = vmatpush3.bf16.msra.mxu1 %v2370_v20 }
 0x597   : > { %2276 = vmatprep.subr.bf16.mxu1 %v2491_v12 }
 0x59a   : > { %2277 = vmatpush3.bf16.msra.mxu1 %v2371_v21 }
 0x59b   : > { %2278 = vmatprep.subr.bf16.mxu1 %v2491_v12 }
 0x59e   : > { %2279 = vmatpush3.bf16.msra.mxu1 %v2372_v22 }
 0x644   : > { %v1492_v43 = vpop.f32.mrf.mxu0 }
 0x645   : > { %v1504_v49 = vadd.f32 %v2091_v44, %v1492_v43 }
 0x646   : > { %v2244_v36 = vpop.f32.mrf.mxu0 }
 0x648   : > { %v1495_v45 = vpop.f32.mrf.mxu0  ;;  %v1546_v46 = vpop.f32.mrf.mxu1 }
 0x649   : > { %v1552_v54 = vadd.f32 %v1546_v46, %v1504_v49 }
 0x64a   : > { %v2245_v47 = vpop.f32.mrf.mxu0  ;;  %v2250_v48 = vpop.f32.mrf.mxu1 }
 0x64c   : > { %v1549_v50 = vpop.f32.mrf.mxu1  ;;  %v1594_v53 = vpop.f32.mrf.mxu0 }
 0x64d   : > { %v1600_v57 = vadd.f32 %v1594_v53, %v1552_v54 }
 0x64e   : > { %v2251_v55 = vpop.f32.mrf.mxu1  ;;  %v2256_v56 = vpop.f32.mrf.mxu0 }
 0x650   : > { %v1597_v58 = vpop.f32.mrf.mxu0  ;;  %v1642_v59 = vpop.f32.mrf.mxu1 }
 0x651   : > { %v1648_v60 = vadd.f32 %v1642_v59, %v1600_v57 }
 0x652   : > { %v2257_v61 = vpop.f32.mrf.mxu0  ;;  %v2262_v62 = vpop.f32.mrf.mxu1 }
 0x653   : > { %v1649_v63 = vadd.f32 %v1648_v60, %v2722_v3 }
 0x654   : > { %v1645_v0 = vpop.f32.mrf.mxu1 }
 0x655   : > { %v1652_v1 = vsel %vm710_vm1, %v1649_v63, 0.0 }
 0x656   : > { %v2263_v2 = vpop.f32.mrf.mxu1  ;;  %1653 = vadd.xlane.f32.xlu1 %v1652_v1 }
 0x6df   : > { %v1654_v4 = vpop.xlane.xlu1 %1653 }
 0x6e0   : > { %v1655_v51 = vmul.f32 0.03125, %v1654_v4 }
 0x6e2   : > { %v1656_v52 = vsub.f32 %v1649_v63, %v1655_v51 }
 0x6e4   : > { %v1657_v5 = vmul.f32 %v1656_v52, %v1656_v52 }
 0x6e6   : > { %v1658_v6 = vsel %vm710_vm1, %v1657_v5, 0.0 }
 0x6e7   : > { %1659 = vadd.xlane.f32.xlu0 %v1658_v6 }
 0x770   : > { %v1660_v3 = vpop.xlane.xlu0 %1659 }
 0x771   : > { %v1661_v9 = vmul.f32 0.03125, %v1660_v3 }
 0x773   : > { %v1662_v10 = vadd.f32 1e-05, %v1661_v9 }
 0x775   : > { %2391 = vrsqrt.f32 %v1662_v10 }
 0x782   : > { %v2392_v11 = vpop.eup %2391 }
 0x783   : > { %v1664_v14 = vmul.f32 %v2392_v11, %v1656_v52 }
 0x785   : > { %v1671_v16 = vmul.f32 %v2095_v13, %v1664_v14 }
 0x787   : > { %v1678_v17 = vadd.f32 %v2096_v15, %v1671_v16 }
 0x789   : > { %v1679_v18 = vpack.c.bf16 %v1678_v17, %v1678_v17 }
 0x78b   : > { %2269 = vmatmul.mubr.msk.bf16.vlgmr.msra.gmra.mxu0 %vm710_vm1, %v1679_v18 }
 0x84b   : > { %v1740_v24 = vpop.f32.mrf.mxu0 }
 0x84c   : > { %v1741_v25 = vadd.f32 %v2097_v23, %v1740_v24 }
 0x84d   : > { %v2270_v26 = vpop.f32.mrf.mxu0 }
 0x84e   : > { %v2101_v27 = vmul.f32 -1.702, %v1741_v25 }
 0x84f   : > { %v1743_v28 = vpop.f32.mrf.mxu0 }
 0x850   : > { %v1748_v29 = vmul.f32 1.442695, %v2101_v27 }
 0x851   : > { %v2271_v30 = vpop.f32.mrf.mxu0 }
 0x852   : > { %2393 = vpow2.f32 %v1748_v29 }
 0x85f   : > { %v2394_v31 = vpop.eup %2393 }
 0x860   : > { %v1750_v12 = vadd.f32 1.0, %v2394_v31 }
 0x862   : > { %2395 = vrcp.f32 %v1750_v12 }
 0x86f   : > { %v2396_v32 = vpop.eup %2395 }
 0x870   : > { %v1753_v33 = vmul.f32 %v2396_v32, %v1741_v25 }
 0x872   : > { %v1754_v34 = vpack.c.bf16 %v1753_v33, %v1753_v33 }
 0x874   : > { %2281 = vmatmul.mubr.msk.bf16.vlgmr.msra.gmra.mxu1 %vm1794_vm5, %v1754_v34 }
 0x934   : > { %v1832_v37 = vpop.f32.mrf.mxu1 }
 0x935   : > { %v1833_v38 = vadd.f32 %v2102_v35, %v1832_v37 }
 0x936   : > { %v2282_v39 = vpop.f32.mrf.mxu1 }
 0x937   : > { %v1838_v40 = vadd.f32 %v1833_v38, %v1649_v63 }
 0x938   : > { %v1835_v41 = vpop.f32.mrf.mxu1 }
 0x939   : > { %1839 = vst.msk [vmem:[%s2714_s22] sm:$0xff] %vm710_vm1, %v1838_v40 }
 0x93a   : > { %v2283_v42 = vpop.f32.mrf.mxu1 }
 0x93b   : > { %2410 = shalt.err (!%p2407_p8)
}
 0x93c   : > { %s2411_s22 = scalar_lea.hbm %s2919_s5, 128  ;;  %s2415_s18 = scalar_lea.hbm %s3047_s2, 256 }
 0x93d   : > { %p2412_p10 = scmp.ne.s32.totalorder %s2919_s5, %s2411_s22  ;;  %p2416_p13 = scmp.lt.s32.totalorder %s2919_s5, %s3047_s2 }
 0x93e   : > { %p2417_p0 = scmp.lt.s32.totalorder %s2415_s18, %s2411_s22 }
 0x93f   : > { %p2413_p11 = pnand %p2412_p10, %p2625_p3 }
 0x940   : > { %p2418_p1 = por %p2417_p0, %p2416_p13 }
 0x941   : > { %p2414_p12 = pneg %p2413_p11 }
 0x943   : > { %p2419_p2 = pnand %p2418_p1, %p2414_p12 }
 0x945   : > { %2422 = shalt.err (!%p2419_p2)
}
 0x946   : > { %2284 = dma.vmem_to_hbm [thread:$0]  (%p2625_p3), %s2921_s15, 128, %s2919_s5, %s1841_s19  }
 0x947 PF: > { %s3049_s4 = sld [smem:[#allocation12_spill]] }
 0x948   : > { %s3050_s20 = sld [smem:[#allocation5_spill]] }
 0x94d   : > { %p2290_p4 = scmp.ge.s32.totalorder %s3049_s4, 2 }
 0x94e   : > { %s1866_s28 = sand.u32 1, %s3050_s20  }
 0x94f   : > { %p2287_p5 = pnand %p2290_p4, %p2635_p9  ;;  %s1867_s30 = scalar_lea.sflag [#allocation3], %s1866_s28 }
 0x951   : > { %p2288_p6 = pneg %p2287_p5 }
 0x953   : > { %2456 = dma.done.wait (%p2288_p6), %s1867_s30, 128  }
 0x954   : > { %2458 = vsyncadd (%p2288_p6), %s1867_s30, 4294967168  ;;  %s28_s25 = sadd.s32 1, %s3049_s4   ;;  %s3052_s18 = sld [smem:[#allocation6_spill]] }
 0x955   : > { %p25_p7 = scmp.ge.s32.totalorder %s28_s25, 6   ;;  %s3053_s19 = sld [smem:[#allocation7_spill]] }
 0x956   : > { %s3054_s20 = sld [smem:[#allocation17_spill]] }
 0x957   : > { %s3055_s21 = sld [smem:[#allocation10_spill]]  ;;  %27 = sbr.rel (!%p25_p7) target bundleno = 13 (0xd), region = 155 }
 0x958   : > { %s3056_s22 = sld [smem:[#allocation11_spill]] }
 0x959   : > { %s3057_s23 = sld [smem:[#allocation13_spill]] }
 0x95a   : > { %s3058_s24 = sld [smem:[#allocation15_spill]] }
 0x95c   :  { %1872 = vsyncpa [#allocation3], 1 }
 0x95d   :  { %1874 = vsyncpa [#allocation3 + $0x1], 1 }

</bundles_post_ra>
